<compile_context>
chip_gen: v6e
topology: v6e:2x2x1
jax: 0.10.0
libtpu: 0.0.40
codegen_flags: <defaults>
</compile_context>

<pallas_src>
import jax
import jax.numpy as jnp
from jax.experimental import pallas as pl
from jax.experimental.pallas import tpu as pltpu


def _round_up(x, m):
    return ((x + m - 1) // m) * m


def _pick_tile(n, candidates=(512, 256, 128)):
    for t in candidates:
        if n % t == 0:
            return t
    return n


def _rgcn_layer_kernel(a_ref, v_ref, hk_ref, hi_ref, wself_ref, bias_ref, out_ref):
    """One R-GCN layer (basis-combined form).

    Grid: (row_tiles [parallel], num_bases [arbitrary], k_tiles [arbitrary]).
    The output block is VMEM-resident across the two reduction axes and is
    used directly as the f32 accumulator.
    """
    b = pl.program_id(1)
    k = pl.program_id(2)

    # First reduction step for this row tile: init with self-loop + bias.
    @pl.when((b == 0) & (k == 0))
    def _():
        out_ref[...] = (
            jnp.dot(hi_ref[...], wself_ref[...],
                    preferred_element_type=jnp.float32)
            + bias_ref[...]
        )

    # msg = H[k-tile] @ V_b  (f32 accumulate, then bf16 for the adjacency matmul)
    msg = jnp.dot(hk_ref[...], v_ref[...], preferred_element_type=jnp.float32)
    out_ref[...] += jnp.dot(a_ref[...], msg.astype(a_ref.dtype),
                            preferred_element_type=jnp.float32)

    # Last reduction step: ReLU in place.
    @pl.when((b == pl.num_programs(1) - 1) & (k == pl.num_programs(2) - 1))
    def _():
        out_ref[...] = jnp.maximum(out_ref[...], 0.0)


def rgcn_layer(a_basis, h, v_bases, w_self, bias):
    """a_basis: (B, Np, Np) bf16   h: (Np, Din_p) bf16
    v_bases: (B, Din_p, Dout_p) bf16   w_self: (Din_p, Dout_p) bf16
    bias: (1, Dout_p) f32   ->   (Np, Dout_p) f32"""
    num_bases, n, _ = a_basis.shape
    d_in = h.shape[1]
    d_out = v_bases.shape[2]
    tm = _pick_tile(n)
    tk = _pick_tile(n)

    return pl.pallas_call(
        _rgcn_layer_kernel,
        out_shape=jax.ShapeDtypeStruct((n, d_out), jnp.float32),
        grid_spec=pltpu.PrefetchScalarGridSpec(
            num_scalar_prefetch=0,
            grid=(n // tm, num_bases, n // tk),
            in_specs=[
                pl.BlockSpec((None, tm, tk), lambda i, b, k: (b, i, k)),       # A_b tile
                pl.BlockSpec((None, d_in, d_out), lambda i, b, k: (b, 0, 0)),  # V_b
                pl.BlockSpec((tk, d_in), lambda i, b, k: (k, 0)),              # H rows for msg
                pl.BlockSpec((tm, d_in), lambda i, b, k: (i, 0)),              # H rows for self-loop
                pl.BlockSpec((d_in, d_out), lambda i, b, k: (0, 0)),           # W_self
                pl.BlockSpec((1, d_out), lambda i, b, k: (0, 0)),              # bias
            ],
            out_specs=pl.BlockSpec((tm, d_out), lambda i, b, k: (i, 0)),
        ),
        compiler_params=pltpu.CompilerParams(
            dimension_semantics=("parallel", "arbitrary", "arbitrary"),
            vmem_limit_bytes=32 * 1024 * 1024,
        ),
    )(a_basis, v_bases, h, h, w_self, bias)


class RGCNPallas:
    """Mirrors BaseRGCN: build_model() stacks num_hidden_layers RelGraphConv
    (basis) layers; forward() runs them and returns the node features.
    The final hidden layer projects h_dim -> out_dim."""

    def __init__(self, num_nodes, h_dim, out_dim, num_rels, num_bases=-1,
                 num_hidden_layers=1, dropout=0.0, key=None):
        self.num_nodes = num_nodes
        self.h_dim = h_dim
        self.out_dim = out_dim
        self.num_rels = num_rels
        self.num_bases = num_bases if num_bases > 0 else num_rels
        self.num_hidden_layers = num_hidden_layers
        self.dropout = dropout  # TODO(synk): training-mode dropout not applied (inference path, dropout=0 in benchmark).
        key = jax.random.PRNGKey(0) if key is None else key
        self._build_model(key)

    def _build_model(self, key):
        self.layers = []
        for idx in range(self.num_hidden_layers):
            d_in = self.h_dim
            d_out = self.out_dim if idx == self.num_hidden_layers - 1 else self.h_dim
            d_in_p = _round_up(d_in, 128)
            d_out_p = _round_up(d_out, 128)
            key, k1, k2, k3 = jax.random.split(key, 4)
            bases = jax.random.normal(k1, (self.num_bases, d_in, d_out), jnp.float32) * 0.1
            coeff = jax.random.normal(k2, (self.num_rels, self.num_bases), jnp.float32) * 0.1
            w_self = jax.random.normal(k3, (d_in, d_out), jnp.float32) * 0.1
            bias = jnp.zeros((1, d_out), jnp.float32)
            # Lane-pad to multiples of 128 (zero rows/cols are inert).
            bases_p = jnp.zeros((self.num_bases, d_in_p, d_out_p), jnp.float32
                                ).at[:, :d_in, :d_out].set(bases)
            w_self_p = jnp.zeros((d_in_p, d_out_p), jnp.float32
                                 ).at[:d_in, :d_out].set(w_self)
            bias_p = jnp.zeros((1, d_out_p), jnp.float32).at[:, :d_out].set(bias)
            self.layers.append(dict(
                coeff=coeff,
                bases=bases_p.astype(jnp.bfloat16),
                w_self=w_self_p.astype(jnp.bfloat16),
                bias=bias_p,
            ))

    def __call__(self, adj_norm, h):
        n = adj_norm.shape[1]
        n_p = _round_up(n, 128)
        d_in_p = _round_up(h.shape[1], 128)
        adj_p = jnp.zeros((self.num_rels, n_p, n_p), jnp.float32
                          ).at[:, :n, :n].set(adj_norm)
        h_p = jnp.zeros((n_p, d_in_p), jnp.float32
                        ).at[:n, :h.shape[1]].set(h).astype(jnp.bfloat16)
        out = h_p.astype(jnp.float32)
        for layer in self.layers:
            # Basis-combined adjacency: A_b = sum_r coeff[r,b] A_r (param glue).
            a_basis = jnp.einsum("rb,rnm->bnm", layer["coeff"], adj_p
                                 ).astype(jnp.bfloat16)
            out = rgcn_layer(a_basis, h_p, layer["bases"], layer["w_self"],
                             layer["bias"])
            h_p = out.astype(jnp.bfloat16)
        return out[:n, :self.out_dim]


def _reference_forward(model, adj_norm, h):
    """Pure-JAX reference of the same math (bf16 inputs, f32 accumulation)."""
    n = adj_norm.shape[1]
    n_p = _round_up(n, 128)
    d_in_p = _round_up(h.shape[1], 128)
    adj_p = jnp.zeros((model.num_rels, n_p, n_p), jnp.float32
                      ).at[:, :n, :n].set(adj_norm)
    h_p = jnp.zeros((n_p, d_in_p), jnp.float32
                    ).at[:n, :h.shape[1]].set(h).astype(jnp.bfloat16)
    out = h_p.astype(jnp.float32)
    for layer in model.layers:
        a_b = jnp.einsum("rb,rnm->bnm", layer["coeff"], adj_p).astype(jnp.bfloat16)
        msg = jnp.einsum("nd,bde->bne", h_p, layer["bases"],
                         preferred_element_type=jnp.float32).astype(jnp.bfloat16)
        agg = jnp.einsum("bnm,bme->ne", a_b, msg,
                         preferred_element_type=jnp.float32)
        slf = jnp.dot(h_p, layer["w_self"], preferred_element_type=jnp.float32)
        out = jnp.maximum(agg + slf + layer["bias"], 0.0)
        h_p = out.astype(jnp.bfloat16)
    return out[:n, :model.out_dim]


def _make_graph(key, num_nodes, num_rels, edges_per_rel=256):
    """Dense per-relation adjacency with in-degree normalization (c_{i,r})."""
    adjs = []
    for _ in range(num_rels):
        key, ks, kd = jax.random.split(key, 3)
        src = jax.random.randint(ks, (edges_per_rel,), 0, num_nodes)
        dst = jax.random.randint(kd, (edges_per_rel,), 0, num_nodes)
        a = jnp.zeros((num_nodes, num_nodes), jnp.float32).at[dst, src].add(1.0)
        deg = jnp.sum(a, axis=1, keepdims=True)
        a = a / jnp.maximum(deg, 1.0)
        adjs.append(a)
    return jnp.stack(adjs, axis=0)


if __name__ == "__main__":
    num_nodes = 100
    h_dim = 64
    out_dim = 48
    num_rels = 8
    num_bases = 2
    num_hidden_layers = 2

    root = jax.random.PRNGKey(0)
    k_graph, k_feat, k_model = jax.random.split(root, 3)

    adj_norm = _make_graph(k_graph, num_nodes, num_rels, edges_per_rel=256)   # (R, N, N)
    h0 = jax.random.normal(k_feat, (num_nodes, h_dim), jnp.float32)           # (N, h_dim)

    model = RGCNPallas(num_nodes, h_dim, out_dim, num_rels,
                       num_bases=num_bases,
                       num_hidden_layers=num_hidden_layers,
                       dropout=0.0, key=k_model)

    out = jax.block_until_ready(model(adj_norm, h0))
    ref = jax.block_until_ready(_reference_forward(model, adj_norm, h0))

    assert out.shape == (num_nodes, out_dim)
    assert jnp.allclose(out, ref, atol=1e-2, rtol=1e-2), float(
        jnp.max(jnp.abs(out - ref)))

    print("KERNEL_OK")
</pallas_src>

<mosaic_0001>
module attributes {stable_mosaic.version = 11 : i64} {
  func.func @_rgcn_layer_kernel(%arg0: i32, %arg1: i32, %arg2: i32, %arg3: memref<1x128x128xbf16, #tpu.memory_space<vmem>>, %arg4: memref<1x128x128xbf16, #tpu.memory_space<vmem>>, %arg5: memref<128x128xbf16, #tpu.memory_space<vmem>>, %arg6: memref<128x128xbf16, #tpu.memory_space<vmem>>, %arg7: memref<128x128xbf16, #tpu.memory_space<vmem>>, %arg8: memref<1x128xf32, #tpu.memory_space<vmem>>, %arg9: memref<128x128xf32, #tpu.memory_space<vmem>>) attributes {dimension_semantics = [#tpu.dimension_semantics<parallel>, #tpu.dimension_semantics<arbitrary>, #tpu.dimension_semantics<arbitrary>], iteration_bounds = array<i64: 1, 2, 1>, scalar_prefetch = 0 : i64, scratch_operands = 0 : i64, tpu.core_type = #tpu.core_type<tc>, window_params = [{transform_indices = @transform_0, window_bounds = array<i64: 1, 128, 128>}, {transform_indices = @transform_1, window_bounds = array<i64: 1, 128, 128>}, {transform_indices = @transform_2, window_bounds = array<i64: 128, 128>}, {transform_indices = @transform_3, window_bounds = array<i64: 128, 128>}, {pipeline_mode = #tpu.pipeline_mode<synchronous>, transform_indices = @transform_4, window_bounds = array<i64: 128, 128>}, {pipeline_mode = #tpu.pipeline_mode<synchronous>, transform_indices = @transform_5, window_bounds = array<i64: 1, 128>}, {transform_indices = @transform_6, window_bounds = array<i64: 128, 128>}]} {
    %c0_i32 = arith.constant 0 : i32
    %0 = arith.cmpi eq, %arg1, %c0_i32 : i32
    %c0_i32_0 = arith.constant 0 : i32
    %1 = arith.cmpi eq, %arg2, %c0_i32_0 : i32
    %2 = arith.andi %0, %1 : i1
    %3 = arith.extui %2 : i1 to i32
    %c0_i32_1 = arith.constant 0 : i32
    %4 = arith.cmpi ne, %3, %c0_i32_1 : i32
    scf.if %4 {
      %c0_16 = arith.constant 0 : index
      %c0_17 = arith.constant 0 : index
      %21 = vector.load %arg6[%c0_16, %c0_17] : memref<128x128xbf16, #tpu.memory_space<vmem>>, vector<128x128xbf16>
      %c0_18 = arith.constant 0 : index
      %c0_19 = arith.constant 0 : index
      %22 = vector.load %arg7[%c0_18, %c0_19] : memref<128x128xbf16, #tpu.memory_space<vmem>>, vector<128x128xbf16>
      %cst_20 = arith.constant dense<0.000000e+00> : vector<128x128xf32>
      %23 = tpu.matmul %21, %22, %cst_20 {dimension_numbers = #tpu.dot_dimension_numbers<[1], [0], [0], [1], [0, 0, 1, 1], [], []>} : vector<128x128xbf16>, vector<128x128xbf16>, vector<128x128xf32> -> vector<128x128xf32>
      %c0_21 = arith.constant 0 : index
      %c0_22 = arith.constant 0 : index
      %24 = vector.load %arg8[%c0_21, %c0_22] : memref<1x128xf32, #tpu.memory_space<vmem>>, vector<1x128xf32>
      %25 = vector.broadcast %24 : vector<1x128xf32> to vector<128x128xf32>
      %26 = arith.addf %23, %25 : vector<128x128xf32>
      %c0_23 = arith.constant 0 : index
      %c0_24 = arith.constant 0 : index
      %27 = vector.load %arg9[%c0_23, %c0_24] : memref<128x128xf32, #tpu.memory_space<vmem>>, vector<128x128xf32>
      tpu.vector_store %arg9[%c0_23, %c0_24], %26 {strides = array<i32>} : memref<128x128xf32, #tpu.memory_space<vmem>>, vector<128x128xf32>,
    } else {
    }
    %c0 = arith.constant 0 : index
    %c0_2 = arith.constant 0 : index
    %5 = vector.load %arg5[%c0, %c0_2] : memref<128x128xbf16, #tpu.memory_space<vmem>>, vector<128x128xbf16>
    %c0_3 = arith.constant 0 : index
    %c0_4 = arith.constant 0 : index
    %c0_5 = arith.constant 0 : index
    %6 = vector.load %arg4[%c0_3, %c0_4, %c0_5] : memref<1x128x128xbf16, #tpu.memory_space<vmem>>, vector<1x128x128xbf16>
    %7 = vector.shape_cast %6 : vector<1x128x128xbf16> to vector<128x128xbf16>
    %cst = arith.constant dense<0.000000e+00> : vector<128x128xf32>
    %8 = tpu.matmul %5, %7, %cst {dimension_numbers = #tpu.dot_dimension_numbers<[1], [0], [0], [1], [0, 0, 1, 1], [], []>} : vector<128x128xbf16>, vector<128x128xbf16>, vector<128x128xf32> -> vector<128x128xf32>
    %c0_6 = arith.constant 0 : index
    %c0_7 = arith.constant 0 : index
    %9 = vector.load %arg9[%c0_6, %c0_7] : memref<128x128xf32, #tpu.memory_space<vmem>>, vector<128x128xf32>
    %c0_8 = arith.constant 0 : index
    %c0_9 = arith.constant 0 : index
    %c0_10 = arith.constant 0 : index
    %10 = vector.load %arg3[%c0_8, %c0_9, %c0_10] : memref<1x128x128xbf16, #tpu.memory_space<vmem>>, vector<1x128x128xbf16>
    %11 = vector.shape_cast %10 : vector<1x128x128xbf16> to vector<128x128xbf16>
    %12 = arith.truncf %8 : vector<128x128xf32> to vector<128x128xbf16>
    %cst_11 = arith.constant dense<0.000000e+00> : vector<128x128xf32>
    %13 = tpu.matmul %11, %12, %cst_11 {dimension_numbers = #tpu.dot_dimension_numbers<[1], [0], [0], [1], [0, 0, 1, 1], [], []>} : vector<128x128xbf16>, vector<128x128xbf16>, vector<128x128xf32> -> vector<128x128xf32>
    %14 = arith.addf %9, %13 : vector<128x128xf32>
    %c0_12 = arith.constant 0 : index
    %c0_13 = arith.constant 0 : index
    %15 = vector.load %arg9[%c0_12, %c0_13] : memref<128x128xf32, #tpu.memory_space<vmem>>, vector<128x128xf32>
    tpu.vector_store %arg9[%c0_12, %c0_13], %14 {strides = array<i32>} : memref<128x128xf32, #tpu.memory_space<vmem>>, vector<128x128xf32>,
    %c1_i32 = arith.constant 1 : i32
    %16 = arith.cmpi eq, %arg1, %c1_i32 : i32
    %c0_i32_14 = arith.constant 0 : i32
    %17 = arith.cmpi eq, %arg2, %c0_i32_14 : i32
    %18 = arith.andi %16, %17 : i1
    %19 = arith.extui %18 : i1 to i32
    %c0_i32_15 = arith.constant 0 : i32
    %20 = arith.cmpi ne, %19, %c0_i32_15 : i32
    scf.if %20 {
      %c0_16 = arith.constant 0 : index
      %c0_17 = arith.constant 0 : index
      %21 = vector.load %arg9[%c0_16, %c0_17] : memref<128x128xf32, #tpu.memory_space<vmem>>, vector<128x128xf32>
      %cst_18 = arith.constant 0.000000e+00 : f32
      %22 = vector.broadcast %cst_18 : f32 to vector<128x128xf32>
      %23 = arith.maximumf %21, %22 : vector<128x128xf32>
      %c0_19 = arith.constant 0 : index
      %c0_20 = arith.constant 0 : index
      %24 = vector.load %arg9[%c0_19, %c0_20] : memref<128x128xf32, #tpu.memory_space<vmem>>, vector<128x128xf32>
      tpu.vector_store %arg9[%c0_19, %c0_20], %23 {strides = array<i32>} : memref<128x128xf32, #tpu.memory_space<vmem>>, vector<128x128xf32>,
    } else {
    }
    return
  }
  func.func @transform_0(%arg0: i32, %arg1: i32, %arg2: i32) -> (i32, i32, i32) {
    %c0_i32 = arith.constant 0 : i32
    return %arg1, %arg0, %arg2 : i32, i32, i32
  }
  func.func @transform_1(%arg0: i32, %arg1: i32, %arg2: i32) -> (i32, i32, i32) {
    %c0_i32 = arith.constant 0 : i32
    %c0_i32_0 = arith.constant 0 : i32
    %c0_i32_1 = arith.constant 0 : i32
    return %arg1, %c0_i32, %c0_i32_0 : i32, i32, i32
  }
  func.func @transform_2(%arg0: i32, %arg1: i32, %arg2: i32) -> (i32, i32) {
    %c0_i32 = arith.constant 0 : i32
    %c0_i32_0 = arith.constant 0 : i32
    return %arg2, %c0_i32 : i32, i32
  }
  func.func @transform_3(%arg0: i32, %arg1: i32, %arg2: i32) -> (i32, i32) {
    %c0_i32 = arith.constant 0 : i32
    %c0_i32_0 = arith.constant 0 : i32
    return %arg0, %c0_i32 : i32, i32
  }
  func.func @transform_4(%arg0: i32, %arg1: i32, %arg2: i32) -> (i32, i32) {
    %c0_i32 = arith.constant 0 : i32
    %c0_i32_0 = arith.constant 0 : i32
    %c0_i32_1 = arith.constant 0 : i32
    return %c0_i32, %c0_i32_0 : i32, i32
  }
  func.func @transform_5(%arg0: i32, %arg1: i32, %arg2: i32) -> (i32, i32) {
    %c0_i32 = arith.constant 0 : i32
    %c0_i32_0 = arith.constant 0 : i32
    %c0_i32_1 = arith.constant 0 : i32
    return %c0_i32, %c0_i32_0 : i32, i32
  }
  func.func @transform_6(%arg0: i32, %arg1: i32, %arg2: i32) -> (i32, i32) {
    %c0_i32 = arith.constant 0 : i32
    %c0_i32_0 = arith.constant 0 : i32
    return %arg0, %c0_i32 : i32, i32
  }
}

</mosaic_0001>

<bundles_post_ra>
// kernel: tpu_custom_call.1
= control target key start
LH: loop header
LB: loop body
LE: loop exit
PB: predicated region body
PF: predicated region fallthrough
CT: control target
= control target key end

     0   :  { %s2139_s0 = inlined_call_operand.hbm [shape: bf16[2,128,128], index: 0, kind: input, shape index: {}]   ;;  %s2140_s1 = inlined_call_operand.hbm [shape: bf16[2,128,128], index: 1, kind: input, shape index: {}]   ;;  %s2141_s2 = inlined_call_operand.hbm [shape: bf16[128,128], index: 2, kind: input, shape index: {}]   ;;  %s2142_s3 = inlined_call_operand.hbm [shape: bf16[128,128], index: 3, kind: input, shape index: {}]   ;;  %s2143_s4 = inlined_call_operand.hbm [shape: bf16[128,128], index: 4, kind: input, shape index: {}]   ;;  %s2144_s5 = inlined_call_operand.vmem [shape: f32[1,128], index: 5, kind: input, shape index: {}]   ;;  %s2145_s6 = inlined_call_operand.hbm [shape: f32[128,128], index: 6, kind: output, shape index: {}]  }
   0x1   :  { %2150 = sst [smem:[#allocation17_spill]] %s2139_s0 }
   0x2   :  { %11 = vsyncpa [#allocation3], 0 }
   0x3   :  { %13 = vsyncpa [#allocation3 + $0x1], 0 }
   0x4   :  { %14 = vsyncpa [#allocation6], 0 }
   0x5   :  { %16 = vsyncpa [#allocation6 + $0x1], 0 }
   0x6   :  { %17 = vsyncpa [#allocation9], 0 }
   0x7   :  { %18 = vsyncpa [#allocation4], 0  ;;  %s1919_s21 = smov 0   ;;  %s1921_s22 = smov 0  }
   0x8   :  { %s1923_s23 = smov 0   ;;  %s1925_s24 = smov 0  }
   0x9   :  { %s1927_s25 = smov 0   ;;  %s1929_s26 = smov 0  }
   0xa LB: > { %s1948_s27 = sadd.s32 4294967295, %s1872_s26   ;;  %p67_p0 = scmp.ne.s32.totalorder %s1856_s22, %s1852_s21  ;;  %s1872_s26 = sphi %s1929_s26, %s24_s26   ;;  %s1868_s25 = sphi %s1927_s25, %s2162_s25   ;;  %s1864_s24 = sphi %s1925_s24, %s2161_s24   ;;  %s1860_s23 = sphi %s1923_s23, %s2160_s23   ;;  %s1856_s22 = sphi %s1921_s22, %s2159_s22   ;;  %s1852_s21 = sphi %s1919_s21, %s2158_s21  }
   0xb   : > { %p68_p1 = scmp.eq.s32.totalorder %s1948_s27, 0  ;;  %p1278_p2 = scmp.ge.s32.totalorder %s1872_s26, 1 }
   0xc   : > { %p224_p3 = scmp.lt.s32.totalorder %s1872_s26, 3  ;;  %s1874_s30 = smov [#allocation7]  }
   0xd   : > { %p1956_p4 = por %p68_p1, %p67_p0  ;;  %s239_s7 = sshll.u32 %s1874_s30, 4  ;;  %s240_s7 = int_to_ptr.vmem [resolvable:$true] %s239_s7 }
   0xe   : > { %p1960_p5 = pnand %p1278_p2, %p224_p3  ;;  %s1875_s9 = smov [#allocation8]  }
   0xf   : > { %s255_s10 = sshll.u32 %s1875_s9, 4  ;;  %s1876_s11 = smov [#allocation10]   ;;  %s256_s10 = int_to_ptr.vmem [resolvable:$true] %s255_s10 }
  0x10   : > { %p1526_p6 = pneg %p1960_p5  ;;  %s268_s12 = sshll.u32 %s1876_s11, 4  ;;  %s269_s12 = int_to_ptr.vmem [resolvable:$true] %s268_s12 }
  0x11   : > { %s1659_s13 = scalar_lea.vmem %s240_s7, 1024  ;;  %p1667_p12 = scmp.lt.s32.totalorder %s240_s7, %s240_s7 }
  0x12   : > { %p1968_p7 = pnand %p1526_p6, %p68_p1  ;;  %p1660_p9 = scmp.ne.s32.totalorder %s240_s7, %s1659_s13 }
  0x13   : > { %p1668_p13 = scmp.lt.s32.totalorder %s1659_s13, %s1659_s13 }
  0x14   : > { %p1650_p8 = pneg %p1968_p7 }
  0x15   : > { %p1669_p0 = por %p1668_p13, %p1667_p12 }
  0x16   : > { %p1662_p10 = pnand %p1660_p9, %p1650_p8 }
  0x18   : > { %p1663_p11 = pneg %p1662_p10 }
  0x1a   : > { %p1670_p2 = pnand %p1669_p0, %p1663_p11 }
  0x1c   : > { %1673 = shalt.err (!%p1670_p2)
}
  0x1d   : > { %s2146_s14 = smov 64   ;;  %s2148_s15 = smov 4  }
  0x1e   : > { %1529 = dma.hbm_to_vmem [thread:$0]  (!%p1968_p7), %s2141_s2, 1024, %s240_s7, [#allocation6], %s2146_s14, %s2146_s14, %s2148_s15  }
  0x1f   : > { %s1685_s18 = scalar_lea.vmem %s256_s10, 1024  ;;  %p1693_p10 = scmp.lt.s32.totalorder %s256_s10, %s256_s10 }
  0x20   : > { %p1686_p3 = scmp.ne.s32.totalorder %s256_s10, %s1685_s18  ;;  %p1694_p11 = scmp.lt.s32.totalorder %s1685_s18, %s1685_s18 }
  0x22   : > { %p1688_p6 = pnand %p1686_p3, %p1650_p8  ;;  %p1695_p12 = por %p1694_p11, %p1693_p10 }
  0x24   : > { %p1689_p9 = pneg %p1688_p6 }
  0x26   : > { %p1696_p13 = pnand %p1695_p12, %p1689_p9 }
  0x28   : > { %1699 = shalt.err (!%p1696_p13)
}
  0x29   : > { %1532 = dma.hbm_to_vmem [thread:$0]  (!%p1968_p7), %s2142_s3, 1024, %s256_s10, [#allocation9], %s2146_s14, %s2146_s14, %s2148_s15  }
  0x2a   : > { %s1711_s21 = scalar_lea.vmem %s269_s12, 1024  ;;  %p1719_p6 = scmp.lt.s32.totalorder %s269_s12, %s269_s12 }
  0x2b   : > { %p1712_p0 = scmp.ne.s32.totalorder %s269_s12, %s1711_s21  ;;  %p1720_p9 = scmp.lt.s32.totalorder %s1711_s21, %s1711_s21 }
  0x2d   : > { %p1714_p2 = pnand %p1712_p0, %p1650_p8  ;;  %p1721_p10 = por %p1720_p9, %p1719_p6 }
  0x2f   : > { %p1715_p3 = pneg %p1714_p2 }
  0x31   : > { %p1722_p11 = pnand %p1721_p10, %p1715_p3 }
  0x33   : > { %1725 = shalt.err (!%p1722_p11)
}
  0x34   : > { %1535 = dma.hbm_to_vmem [thread:$0]  (!%p1968_p7), %s2143_s4, 1024, %s269_s12, [#allocation9], %s2146_s14, %s2146_s14, %s2148_s15  }
  0x35   : > { %s54_s9 = sadd.s32 1, %s1860_s23  ;;  %s39_s10 = sadd.s32 1, %s1868_s25 }
  0x36   : > { %p61_p8 = scmp.ne.s32.totalorder %s1860_s23, %s1856_s22  ;;  %p41_p12 = scmp.ge.s32.totalorder %s39_s10, 2 }
  0x37   : > { %p62_p13 = scmp.eq.s32.totalorder %s1872_s26, 0  ;;  %p1546_p0 = scmp.lt.s32.totalorder %s1872_s26, 2 }
  0x38   : > { %s285_s8 = sand.u32 1, %s1860_s23   ;;  %s2164_s10 = smov (%p41_p12, %s39_s10), 0 }
  0x39   : > { %p63_p2 = por %p62_p13, %p61_p8  ;;  %s47_s11 = ssub.s32 %s1868_s25, %s2164_s10 }
  0x3a   : > { %s1283_s13 = sshll.u32 %s285_s8, 6  ;;  %p52_p3 = scmp.eq.s32.totalorder %s47_s11, 0 }
  0x3b   : > { %s1342_s16 = sshll.u32 %s1868_s25, 10  ;;  %s289_s17 = scalar_lea.vmem [#allocation2], %s1283_s13 }
  0x3c   : > { %s299_s18 = sshll.u32 %s289_s17, 4  ;;  %s2154_s0 = sld [smem:[#allocation17_spill]]  ;;  %s300_s18 = int_to_ptr.vmem [resolvable:$true] %s299_s18 }
  0x3d   : > { %s2020_s12 = scalar_select %p52_p3, %s1860_s23, %s54_s9  }
  0x3e   : > { %p2027_p7 = pnand %p1546_p0, %p63_p2  ;;  %s2034_s11 = scalar_lea.hbm %s2140_s1, %s1342_s16 }
  0x3f   : > { %s313_s17 = scalar_lea.vmem [#allocation5], %s1283_s13  ;;  %s286_s15 = scalar_lea.sflag [#allocation3], %s285_s8 }
  0x40   : > { %s320_s9 = sshll.u32 %s313_s17, 4  ;;  %p1728_p6 = pneg %p2027_p7  ;;  %s2036_s9 = int_to_ptr.vmem [resolvable:$true] %s320_s9 }
  0x41   : > { %s1739_s19 = scalar_lea.vmem %s300_s18, 1024  ;;  %s1879_s20 = smov [#allocation2]  }
  0x42   : > { %s298_s21 = scalar_lea.hbm %s2154_s0, %s1342_s16  ;;  %p1740_p9 = scmp.ne.s32.totalorder %s300_s18, %s1739_s19 }
  0x43   : > { %s1744_s0 = sshll.u32 %s1879_s20, 4  ;;  %s1745_s0 = int_to_ptr.vmem [resolvable:$false] %s1744_s0 }
  0x44   : > { %p1742_p10 = pnand %p1740_p9, %p1728_p6  ;;  %s1746_s14 = scalar_lea.vmem %s1745_s0, 2048 }
  0x45   : > { %p1747_p8 = scmp.lt.s32.totalorder %s300_s18, %s1745_s0  ;;  %p1748_p12 = scmp.lt.s32.totalorder %s1746_s14, %s1739_s19 }
  0x46   : > { %p1743_p11 = pneg %p1742_p10 }
  0x47   : > { %p1749_p13 = por %p1748_p12, %p1747_p8 }
  0x49   : > { %p1750_p0 = pnand %p1749_p13, %p1743_p11 }
  0x4b   : > { %1753 = shalt.err (!%p1750_p0)
}
  0x4c   : > { %s2156_s8 = smov 4   ;;  %s2157_s13 = smov 64  }
  0x4d   : > { %1539 = dma.hbm_to_vmem [thread:$0]  (!%p2027_p7), %s298_s21, 1024, %s300_s18, %s286_s15, %s2157_s13, %s2157_s13, %s2156_s8  }
  0x4e   : > { %s309_s16 = sand.u32 1, %s1872_s26   ;;  %s1767_s17 = scalar_lea.vmem %s2036_s9, 1024 }
  0x4f   : > { %s310_s7 = scalar_lea.sflag [#allocation6], %s309_s16  ;;  %p1768_p2 = scmp.ne.s32.totalorder %s2036_s9, %s1767_s17 }
  0x50   : > { %s1880_s0 = smov [#allocation5]  }
  0x51   : > { %p1770_p3 = pnand %p1768_p2, %p1728_p6  ;;  %s1772_s19 = sshll.u32 %s1880_s0, 4  ;;  %s1773_s19 = int_to_ptr.vmem [resolvable:$false] %s1772_s19 }
  0x52   : > { %s1774_s20 = scalar_lea.vmem %s1773_s19, 2048  ;;  %p1775_p10 = scmp.lt.s32.totalorder %s2036_s9, %s1773_s19 }
  0x53   : > { %p1771_p9 = pneg %p1770_p3  ;;  %p1776_p11 = scmp.lt.s32.totalorder %s1774_s20, %s1767_s17 }
  0x55   : > { %p1777_p8 = por %p1776_p11, %p1775_p10 }
  0x57   : > { %p1778_p12 = pnand %p1777_p8, %p1771_p9 }
  0x59   : > { %1781 = shalt.err (!%p1778_p12)
}
  0x5a   : > { %1542 = dma.hbm_to_vmem [thread:$0]  (!%p2027_p7), %s2034_s11, 1024, %s2036_s9, %s310_s7, %s2157_s13, %s2157_s13, %s2156_s8  }
  0x5b   : > { %332 = sbr.rel (%p1960_p5) target bundleno = 888 (0x378), region = 44  ;;  %s334_s15 = sand.u32 (!%p1960_p5), 1, %s1856_s22  }
  0x5c   : > { %s1290_s18 = sshll.u32 (!%p1960_p5), %s334_s15, 6  ;;  %s335_s21 = scalar_lea.sflag (!%p1960_p5), [#allocation3], %s334_s15 }
  0x5d   : > { %s2065_s14 = scalar_lea.vmem (!%p1960_p5), [#allocation2], %s1290_s18 }
  0x60   : > { %1831 = dma.done.wait (%p1956_p4), %s335_s21, 1024  }
  0x61   : > { %1833 = vsyncadd (%p1956_p4), %s335_s21, 4294966272  ;;  %s343_s30 = sand.u32 1, %s1948_s27   ;;  %s2072_s11 = scalar_lea.vmem [#allocation5], %s1290_s18 }
  0x62   : > { %s344_s16 = scalar_lea.sflag [#allocation6], %s343_s30 }
  0x63   : > { %1835 = dma.done.wait (%p1956_p4), %s344_s16, 1024  }
  0x64   : > { %1837 = vsyncadd (%p1956_p4), %s344_s16, 4294966272 }
  0x65   : > { %1839 = dma.done.wait (%p68_p1), [#allocation6], 1024  }
  0x66   : > { %1841 = vsyncadd (%p68_p1), [#allocation6], 4294966272 }
  0x67   : > { %1843 = dma.done.wait (%p68_p1), [#allocation9], 2048  }
  0x68   : > { %1845 = vsyncadd (%p68_p1), [#allocation9], 4294965248  ;;  %p393_p5 = scmp.eq.s32.totalorder %s1864_s24, 0 }
  0x69   : > { %v1608_v0 = vld [vmem:[#allocation10 + $0x38] sm:$0xff] (%p393_p5)   ;;  %v1609_v1 = vld [vmem:[#allocation10 + $0x30] sm:$0xff] (%p393_p5)   ;;  %v1610_v2 = vld [vmem:[#allocation10 + $0x28] sm:$0xff] (%p393_p5)  }
  0x6a   : > { %398 = sbr.rel (!%p393_p5) target bundleno = 348 (0x15c), region = 68  ;;  %1394 = vmatprep.subr.bf16.mxu0 (%p393_p5), %v1608_v0  ;;  %1490 = vmatprep.subr.bf16.mxu1 (%p393_p5), %v1608_v0  ;;  %v1611_v3 = vld [vmem:[#allocation10 + $0x20] sm:$0xff] (%p393_p5)   ;;  %v1612_v6 = vld [vmem:[#allocation10 + $0x18] sm:$0xff] (%p393_p5)   ;;  %v1613_v7 = vld [vmem:[#allocation10 + $0x10] sm:$0xff] (%p393_p5)  }
  0x6b   : > { %1395 = vmatpush3.bf16.msra.mxu0 (%p393_p5), %v1608_v0  ;;  %1498 = vmatpush3.bf16.msra.mxu1 (%p393_p5), %v1608_v0  ;;  %v1616_v4 = vld [vmem:[#allocation8] sm:$0xff] (%p393_p5)   ;;  %v1614_v8 = vld [vmem:[#allocation10 + $0x8] sm:$0xff] (%p393_p5)   ;;  %v1620_v12 = vld [vmem:[#allocation8 + $0x10] sm:$0xff] (%p393_p5)  }
  0x6c   : > { %1396 = vmatprep.subr.bf16.mxu0 (%p393_p5), %v1609_v1  ;;  %1491 = vmatprep.subr.bf16.mxu1 (%p393_p5), %v1609_v1  ;;  %v1617_v5 = vld [vmem:[#allocation8 + $0x20] sm:$0xff] (%p393_p5)   ;;  %v1618_v10 = vld [vmem:[#allocation8 + $0x8] sm:$0xff] (%p393_p5)   ;;  %v1621_v13 = vld [vmem:[#allocation8 + $0x30] sm:$0xff] (%p393_p5)  }
  0x6d   : > { %1410 = vmatprep.mubr.bf16.mxu0 (%p393_p5), %v1616_v4  ;;  %1418 = vmatprep.mubr.bf16.mxu1 (%p393_p5), %v1617_v5  ;;  %v1615_v9 = vld [vmem:[#allocation10] sm:$0xff] (%p393_p5)   ;;  %v1619_v11 = vld [vmem:[#allocation8 + $0x28] sm:$0xff] (%p393_p5)   ;;  %v1622_v14 = vld [vmem:[#allocation8 + $0x18] sm:$0xff] (%p393_p5)  }
  0x6e   : > { %v1623_v15 = vld [vmem:[#allocation8 + $0x38] sm:$0xff] (%p393_p5)   ;;  %v1296_v16 = vld [vmem:[%s2144_s5] ss:$0 sm:$0xff] (%p393_p5) }
  0x6f   : > { %1397 = vmatpush3.bf16.msra.mxu0 %v1609_v1  ;;  %1499 = vmatpush3.bf16.msra.mxu1 %v1609_v1 }
  0x70   : > { %1398 = vmatprep.subr.bf16.mxu0 %v1610_v2  ;;  %1492 = vmatprep.subr.bf16.mxu1 %v1610_v2 }
  0x73   : > { %1399 = vmatpush3.bf16.msra.mxu0 %v1610_v2  ;;  %1500 = vmatpush3.bf16.msra.mxu1 %v1610_v2 }
  0x74   : > { %1400 = vmatprep.subr.bf16.mxu0 %v1611_v3  ;;  %1493 = vmatprep.subr.bf16.mxu1 %v1611_v3 }
  0x77   : > { %1401 = vmatpush3.bf16.msra.mxu0 %v1611_v3  ;;  %1501 = vmatpush3.bf16.msra.mxu1 %v1611_v3 }
  0x78   : > { %1402 = vmatprep.subr.bf16.mxu0 %v1612_v6  ;;  %1494 = vmatprep.subr.bf16.mxu1 %v1612_v6 }
  0x7b   : > { %1403 = vmatpush3.bf16.msra.mxu0 %v1612_v6  ;;  %1502 = vmatpush3.bf16.msra.mxu1 %v1612_v6 }
  0x7c   : > { %1404 = vmatprep.subr.bf16.mxu0 %v1613_v7  ;;  %1495 = vmatprep.subr.bf16.mxu1 %v1613_v7 }
  0x7f   : > { %1405 = vmatpush3.bf16.msra.mxu0 %v1613_v7  ;;  %1503 = vmatpush3.bf16.msra.mxu1 %v1613_v7 }
  0x80   : > { %1406 = vmatprep.subr.bf16.mxu0 %v1614_v8  ;;  %1496 = vmatprep.subr.bf16.mxu1 %v1614_v8 }
  0x83   : > { %1407 = vmatpush3.bf16.msra.mxu0 %v1614_v8  ;;  %1504 = vmatpush3.bf16.msra.mxu1 %v1614_v8 }
  0x84   : > { %1408 = vmatprep.subr.bf16.mxu0 %v1615_v9  ;;  %1497 = vmatprep.subr.bf16.mxu1 %v1615_v9 }
  0x87   : > { %1409 = vmatpush3.bf16.msra.mxu0 %v1615_v9  ;;  %1505 = vmatpush3.bf16.msra.mxu1 %v1615_v9 }
  0x8a   : > { %1411 = vmatmul.mubr.bf16.vlgmr.msra.gmra.mxu0 %v1618_v10  ;;  %1419 = vmatmul.mubr.bf16.vlgmr.msra.gmra.mxu1 %v1619_v11 }
  0x8b   : > { %1414 = vmatprep.mubr.bf16.mxu0 %v1620_v12  ;;  %1422 = vmatprep.mubr.bf16.mxu1 %v1621_v13 }
  0x92   : > { %1415 = vmatmul.mubr.bf16.gmra.mxu0 %v1622_v14  ;;  %1423 = vmatmul.mubr.bf16.gmra.mxu1 %v1623_v15 }
 0x14a   : > { %v1412_v17 = vpop.f32.mrf.mxu0  ;;  %v1420_v18 = vpop.f32.mrf.mxu1 }
 0x14b   : > { %v577_v19 = vadd.f32 %v1412_v17, %v1296_v16  ;;  %v609_v20 = vadd.f32 %v1420_v18, %v1296_v16 }
 0x14c   : > { %v568_v21 = vpop.f32.mrf.mxu0  ;;  %v600_v22 = vpop.f32.mrf.mxu1 }
 0x14d   : > { %633 = vst [vmem:[#allocation11 + $0x10] sm:$0xff] %v577_v19  ;;  %641 = vst [vmem:[#allocation11 + $0x50] sm:$0xff] %v609_v20  ;;  %v569_v23 = vadd.f32 %v1296_v16, %v568_v21  ;;  %v601_v24 = vadd.f32 %v1296_v16, %v600_v22 }
 0x14e   : > { %v1413_v25 = vpop.f32.mrf.mxu0  ;;  %v1421_v26 = vpop.f32.mrf.mxu1 }
 0x14f   : > { %631 = vst [vmem:[#allocation11] sm:$0xff] %v569_v23  ;;  %639 = vst [vmem:[#allocation11 + $0x40] sm:$0xff] %v601_v24  ;;  %v580_v27 = vadd.f32 %v1413_v25, %v1296_v16  ;;  %v612_v28 = vadd.f32 %v1421_v26, %v1296_v16 }
 0x150   : > { %v571_v29 = vpop.f32.mrf.mxu0  ;;  %v603_v30 = vpop.f32.mrf.mxu1 }
 0x151   : > { %634 = vst [vmem:[#allocation11 + $0x18] sm:$0xff] %v580_v27  ;;  %642 = vst [vmem:[#allocation11 + $0x58] sm:$0xff] %v612_v28  ;;  %v572_v31 = vadd.f32 %v1296_v16, %v571_v29  ;;  %v604_v32 = vadd.f32 %v1296_v16, %v603_v30 }
 0x152   : > { %v1416_v33 = vpop.f32.mrf.mxu0  ;;  %v1424_v34 = vpop.f32.mrf.mxu1 }
 0x153   : > { %632 = vst [vmem:[#allocation11 + $0x8] sm:$0xff] %v572_v31  ;;  %640 = vst [vmem:[#allocation11 + $0x48] sm:$0xff] %v604_v32  ;;  %v593_v35 = vadd.f32 %v1416_v33, %v1296_v16  ;;  %v625_v36 = vadd.f32 %v1424_v34, %v1296_v16 }
 0x154   : > { %v584_v37 = vpop.f32.mrf.mxu0  ;;  %v616_v38 = vpop.f32.mrf.mxu1 }
 0x155   : > { %637 = vst [vmem:[#allocation11 + $0x30] sm:$0xff] %v593_v35  ;;  %645 = vst [vmem:[#allocation11 + $0x70] sm:$0xff] %v625_v36  ;;  %v585_v39 = vadd.f32 %v1296_v16, %v584_v37  ;;  %v617_v40 = vadd.f32 %v1296_v16, %v616_v38 }
 0x156   : > { %v1417_v41 = vpop.f32.mrf.mxu0  ;;  %v1425_v42 = vpop.f32.mrf.mxu1 }
 0x157   : > { %635 = vst [vmem:[#allocation11 + $0x20] sm:$0xff] %v585_v39  ;;  %643 = vst [vmem:[#allocation11 + $0x60] sm:$0xff] %v617_v40  ;;  %v596_v43 = vadd.f32 %v1417_v41, %v1296_v16  ;;  %v628_v44 = vadd.f32 %v1425_v42, %v1296_v16 }
 0x158   : > { %v587_v45 = vpop.f32.mrf.mxu0  ;;  %v619_v46 = vpop.f32.mrf.mxu1 }
 0x159   : > { %638 = vst [vmem:[#allocation11 + $0x38] sm:$0xff] %v596_v43  ;;  %646 = vst [vmem:[#allocation11 + $0x78] sm:$0xff] %v628_v44  ;;  %v588_v47 = vadd.f32 %v1296_v16, %v587_v45  ;;  %v620_v48 = vadd.f32 %v1296_v16, %v619_v46 }
 0x15b   : > { %636 = vst [vmem:[#allocation11 + $0x28] sm:$0xff] %v588_v47  ;;  %644 = vst [vmem:[#allocation11 + $0x68] sm:$0xff] %v620_v48 }
 0x15c PF: > { %v1624_v49 = vld [vmem:[%s2072_s11 + $0x38] sm:$0xff]   ;;  %v1625_v50 = vld [vmem:[%s2072_s11 + $0x30] sm:$0xff]   ;;  %v1626_v51 = vld [vmem:[%s2072_s11 + $0x28] sm:$0xff]   ;;  %p1089_p1 = scmp.eq.s32.totalorder %s1864_s24, 1 }
 0x15d   : > { %1426 = vmatprep.subr.bf16.mxu0 %v1624_v49  ;;  %v1627_v52 = vld [vmem:[%s2072_s11 + $0x20] sm:$0xff]   ;;  %v1628_v54 = vld [vmem:[%s2072_s11 + $0x18] sm:$0xff]   ;;  %v1629_v55 = vld [vmem:[%s2072_s11 + $0x10] sm:$0xff]  }
 0x15e   : > { %1427 = vmatpush3.bf16.msra.mxu0 %v1624_v49  ;;  %v1632_v53 = vld [vmem:[#allocation7] sm:$0xff]   ;;  %v1630_v56 = vld [vmem:[%s2072_s11 + $0x8] sm:$0xff]   ;;  %v1634_v59 = vld [vmem:[#allocation7 + $0x10] sm:$0xff]  }
 0x15f   : > { %1428 = vmatprep.subr.bf16.mxu0 %v1625_v50  ;;  %1442 = vmatprep.mubr.bf16.mxu0 %v1632_v53  ;;  %v1631_v57 = vld [vmem:[%s2072_s11] sm:$0xff]   ;;  %v1633_v58 = vld [vmem:[#allocation7 + $0x8] sm:$0xff]   ;;  %v1635_v60 = vld [vmem:[#allocation7 + $0x18] sm:$0xff]  }
 0x160   : > { %v1636_v61 = vld [vmem:[#allocation7 + $0x20] sm:$0xff]   ;;  %v1637_v62 = vld [vmem:[#allocation7 + $0x28] sm:$0xff]   ;;  %v1638_v63 = vld [vmem:[#allocation7 + $0x30] sm:$0xff]  }
 0x161   : > { %v1639_v0 = vld [vmem:[#allocation7 + $0x38] sm:$0xff]   ;;  %v1640_v1 = vld [vmem:[%s2065_s14] sm:$0xff]   ;;  %v1641_v26 = vld [vmem:[%s2065_s14 + $0x8] sm:$0xff]  }
 0x162   : > { %1429 = vmatpush3.bf16.msra.mxu0 %v1625_v50  ;;  %1474 = vmatprep.mubr.bf16.mxu1 %v1640_v1  ;;  %v1642_v27 = vld [vmem:[%s2065_s14 + $0x10] sm:$0xff]   ;;  %v1643_v28 = vld [vmem:[%s2065_s14 + $0x18] sm:$0xff]   ;;  %v1644_v29 = vld [vmem:[%s2065_s14 + $0x20] sm:$0xff]  }
 0x163   : > { %1430 = vmatprep.subr.bf16.mxu0 %v1626_v51  ;;  %v1645_v30 = vld [vmem:[%s2065_s14 + $0x28] sm:$0xff]   ;;  %v1646_v31 = vld [vmem:[%s2065_s14 + $0x30] sm:$0xff]   ;;  %v1647_v32 = vld [vmem:[%s2065_s14 + $0x38] sm:$0xff]  }
 0x164   : > { %v874_v33 = vld [vmem:[#allocation11 + $0x10] sm:$0xff]  ;;  %v872_v35 = vld [vmem:[#allocation11] sm:$0xff]  ;;  %v875_v38 = vld [vmem:[#allocation11 + $0x18] sm:$0xff] }
 0x165   : > { %v873_v41 = vld [vmem:[#allocation11 + $0x8] sm:$0xff]  ;;  %v878_v44 = vld [vmem:[#allocation11 + $0x30] sm:$0xff]  ;;  %v876_v47 = vld [vmem:[#allocation11 + $0x20] sm:$0xff] }
 0x166   : > { %1431 = vmatpush3.bf16.msra.mxu0 %v1626_v51  ;;  %v879_v50 = vld [vmem:[#allocation11 + $0x38] sm:$0xff]  ;;  %v877_v53 = vld [vmem:[#allocation11 + $0x28] sm:$0xff] }
 0x167   : > { %1432 = vmatprep.subr.bf16.mxu0 %v1627_v52  ;;  %v881_v1 = vld [vmem:[#allocation11 + $0x48] sm:$0xff] }
 0x16a   : > { %1433 = vmatpush3.bf16.msra.mxu0 %v1627_v52 }
 0x16b   : > { %1434 = vmatprep.subr.bf16.mxu0 %v1628_v54 }
 0x16e   : > { %1435 = vmatpush3.bf16.msra.mxu0 %v1628_v54 }
 0x16f   : > { %1436 = vmatprep.subr.bf16.mxu0 %v1629_v55 }
 0x172   : > { %1437 = vmatpush3.bf16.msra.mxu0 %v1629_v55 }
 0x173   : > { %1438 = vmatprep.subr.bf16.mxu0 %v1630_v56 }
 0x176   : > { %1439 = vmatpush3.bf16.msra.mxu0 %v1630_v56  ;;  %v882_v56 = vld [vmem:[#allocation11 + $0x50] sm:$0xff] }
 0x177   : > { %1440 = vmatprep.subr.bf16.mxu0 %v1631_v57 }
 0x17a   : > { %1441 = vmatpush3.bf16.msra.mxu0 %v1631_v57 }
 0x17d   : > { %1443 = vmatmul.mubr.bf16.vlgmr.msra.gmra.mxu0 %v1633_v58 }
 0x17e   : > { %1446 = vmatprep.mubr.bf16.mxu0 %v1634_v59  ;;  %v880_v59 = vld [vmem:[#allocation11 + $0x40] sm:$0xff] }
 0x185   : > { %1447 = vmatmul.mubr.bf16.gmra.mxu0 %v1635_v60 }
 0x186   : > { %1450 = vmatprep.mubr.bf16.mxu0 %v1636_v61 }
 0x18d   : > { %1451 = vmatmul.mubr.bf16.gmra.mxu0 %v1637_v62  ;;  %v883_v62 = vld [vmem:[#allocation11 + $0x58] sm:$0xff] }
 0x18e   : > { %1454 = vmatprep.mubr.bf16.mxu0 %v1638_v63 }
 0x195   : > { %1455 = vmatmul.mubr.bf16.gmra.mxu0 %v1639_v0 }
 0x23d   : > { %v1444_v2 = vpop.f32.mrf.mxu0 }
 0x23f   : > { %v809_v3 = vpop.f32.mrf.mxu0 }
 0x241   : > { %v1445_v4 = vpop.f32.mrf.mxu0 }
 0x242   : > { %v905_v24 = vpack.c.bf16 %v1445_v4, %v1444_v2  ;;  %v886_v4 = vld [vmem:[#allocation11 + $0x70] sm:$0xff] }
 0x243   : > { %v812_v5 = vpop.f32.mrf.mxu0 }
 0x244   : > { %v904_v25 = vpack.c.bf16 %v812_v5, %v809_v3 }
 0x245   : > { %v1448_v6 = vpop.f32.mrf.mxu0 }
 0x247   : > { %v825_v7 = vpop.f32.mrf.mxu0 }
 0x249   : > { %v1449_v8 = vpop.f32.mrf.mxu0 }
 0x24a   : > { %v907_v22 = vpack.c.bf16 %v1449_v8, %v1448_v6 }
 0x24b   : > { %v828_v9 = vpop.f32.mrf.mxu0 }
 0x24c   : > { %v906_v23 = vpack.c.bf16 %v828_v9, %v825_v7  ;;  %v884_v7 = vld [vmem:[#allocation11 + $0x60] sm:$0xff] }
 0x24d   : > { %v1452_v10 = vpop.f32.mrf.mxu0 }
 0x24f   : > { %v841_v11 = vpop.f32.mrf.mxu0 }
 0x251   : > { %v1453_v12 = vpop.f32.mrf.mxu0 }
 0x252   : > { %v909_v20 = vpack.c.bf16 %v1453_v12, %v1452_v10  ;;  %v887_v10 = vld [vmem:[#allocation11 + $0x78] sm:$0xff] }
 0x253   : > { %v844_v13 = vpop.f32.mrf.mxu0 }
 0x254   : > { %v908_v21 = vpack.c.bf16 %v844_v13, %v841_v11  ;;  %v885_v13 = vld [vmem:[#allocation11 + $0x68] sm:$0xff] }
 0x255   : > { %v1456_v14 = vpop.f32.mrf.mxu0 }
 0x257   : > { %v857_v15 = vpop.f32.mrf.mxu0 }
 0x259   : > { %v1457_v16 = vpop.f32.mrf.mxu0 }
 0x25a   : > { %v911_v17 = vpack.c.bf16 %v1457_v16, %v1456_v14 }
 0x25b   : > { %v860_v18 = vpop.f32.mrf.mxu0 }
 0x25c   : > { %v910_v19 = vpack.c.bf16 %v860_v18, %v857_v15  ;;  %1458 = vmatprep.subr.bf16.mxu1 %v911_v17 }
 0x25d   : > { %1459 = vmatpush3.bf16.msra.mxu1 %v911_v17 }
 0x25e   : > { %1460 = vmatprep.subr.bf16.mxu1 %v910_v19 }
 0x261   : > { %1461 = vmatpush3.bf16.msra.mxu1 %v910_v19 }
 0x262   : > { %1462 = vmatprep.subr.bf16.mxu1 %v909_v20 }
 0x265   : > { %1463 = vmatpush3.bf16.msra.mxu1 %v909_v20 }
 0x266   : > { %1464 = vmatprep.subr.bf16.mxu1 %v908_v21 }
 0x269   : > { %1465 = vmatpush3.bf16.msra.mxu1 %v908_v21 }
 0x26a   : > { %1466 = vmatprep.subr.bf16.mxu1 %v907_v22 }
 0x26d   : > { %1467 = vmatpush3.bf16.msra.mxu1 %v907_v22 }
 0x26e   : > { %1468 = vmatprep.subr.bf16.mxu1 %v906_v23 }
 0x271   : > { %1469 = vmatpush3.bf16.msra.mxu1 %v906_v23 }
 0x272   : > { %1470 = vmatprep.subr.bf16.mxu1 %v905_v24 }
 0x275   : > { %1471 = vmatpush3.bf16.msra.mxu1 %v905_v24 }
 0x276   : > { %1472 = vmatprep.subr.bf16.mxu1 %v904_v25 }
 0x279   : > { %1473 = vmatpush3.bf16.msra.mxu1 %v904_v25 }
 0x27c   : > { %1475 = vmatmul.mubr.bf16.vlgmr.msra.gmra.mxu1 %v1641_v26 }
 0x27d   : > { %1478 = vmatprep.mubr.bf16.mxu1 %v1642_v27 }
 0x284   : > { %1479 = vmatmul.mubr.bf16.gmra.mxu1 %v1643_v28 }
 0x285   : > { %1482 = vmatprep.mubr.bf16.mxu1 %v1644_v29 }
 0x28c   : > { %1483 = vmatmul.mubr.bf16.gmra.mxu1 %v1645_v30 }
 0x28d   : > { %1486 = vmatprep.mubr.bf16.mxu1 %v1646_v31 }
 0x294   : > { %1487 = vmatmul.mubr.bf16.gmra.mxu1 %v1647_v32 }
 0x33c   : > { %v1476_v34 = vpop.f32.mrf.mxu1 }
 0x33d   : > { %v1059_v36 = vadd.f32 %v1476_v34, %v874_v33 }
 0x33e   : > { %v994_v37 = vpop.f32.mrf.mxu1 }
 0x33f   : > { %1075 = vst [vmem:[#allocation11 + $0x10] sm:$0xff] %v1059_v36  ;;  %v1057_v39 = vadd.f32 %v994_v37, %v872_v35 }
 0x340   : > { %v1477_v40 = vpop.f32.mrf.mxu1 }
 0x341   : > { %1073 = vst [vmem:[#allocation11] sm:$0xff] %v1057_v39  ;;  %v1060_v42 = vadd.f32 %v1477_v40, %v875_v38 }
 0x342   : > { %v997_v43 = vpop.f32.mrf.mxu1 }
 0x343   : > { %1076 = vst [vmem:[#allocation11 + $0x18] sm:$0xff] %v1060_v42  ;;  %v1058_v45 = vadd.f32 %v997_v43, %v873_v41 }
 0x344   : > { %v1480_v46 = vpop.f32.mrf.mxu1 }
 0x345   : > { %1074 = vst [vmem:[#allocation11 + $0x8] sm:$0xff] %v1058_v45  ;;  %v1063_v48 = vadd.f32 %v1480_v46, %v878_v44 }
 0x346   : > { %v1010_v49 = vpop.f32.mrf.mxu1  ;;  %v1096_v19 = vld [vmem:[#allocation11 + $0x10] sm:$0xff] (%p1089_p1) }
 0x347   : > { %1079 = vst [vmem:[#allocation11 + $0x30] sm:$0xff] %v1063_v48  ;;  %v1061_v51 = vadd.f32 %v1010_v49, %v876_v47  ;;  %v1112_v22 = vmax.f32 (%p1089_p1), %v1096_v19, 0.0 }
 0x348   : > { %v1481_v52 = vpop.f32.mrf.mxu1  ;;  %v1094_v17 = vld [vmem:[#allocation11] sm:$0xff] (%p1089_p1) }
 0x349   : > { %1077 = vst [vmem:[#allocation11 + $0x20] sm:$0xff] %v1061_v51  ;;  %v1064_v54 = vadd.f32 %v1481_v52, %v879_v50  ;;  %v1110_v20 = vmax.f32 (%p1089_p1), %v1094_v17, 0.0  ;;  %1128 = vst [vmem:[#allocation11 + $0x10] sm:$0xff] (%p1089_p1), %v1112_v22 }
 0x34a   : > { %v1013_v55 = vpop.f32.mrf.mxu1  ;;  %v1097_v23 = vld [vmem:[#allocation11 + $0x18] sm:$0xff] (%p1089_p1) }
 0x34b   : > { %1080 = vst [vmem:[#allocation11 + $0x38] sm:$0xff] %v1064_v54  ;;  %v1062_v57 = vadd.f32 %v1013_v55, %v877_v53  ;;  %v1113_v26 = vmax.f32 (%p1089_p1), %v1097_v23, 0.0  ;;  %1126 = vst [vmem:[#allocation11] sm:$0xff] (%p1089_p1), %v1110_v20 }
 0x34c   : > { %v1484_v58 = vpop.f32.mrf.mxu1  ;;  %v1095_v18 = vld [vmem:[#allocation11 + $0x8] sm:$0xff] (%p1089_p1) }
 0x34d   : > { %1078 = vst [vmem:[#allocation11 + $0x28] sm:$0xff] %v1062_v57  ;;  %v1067_v60 = vadd.f32 %v1484_v58, %v882_v56  ;;  %v1111_v21 = vmax.f32 (%p1089_p1), %v1095_v18, 0.0  ;;  %1129 = vst [vmem:[#allocation11 + $0x18] sm:$0xff] (%p1089_p1), %v1113_v26 }
 0x34e   : > { %v1026_v61 = vpop.f32.mrf.mxu1  ;;  %v1100_v29 = vld [vmem:[#allocation11 + $0x30] sm:$0xff] (%p1089_p1) }
 0x34f   : > { %1083 = vst [vmem:[#allocation11 + $0x50] sm:$0xff] %v1067_v60  ;;  %v1065_v63 = vadd.f32 %v1026_v61, %v880_v59  ;;  %1127 = vst [vmem:[#allocation11 + $0x8] sm:$0xff] (%p1089_p1), %v1111_v21  ;;  %v1116_v32 = vmax.f32 (%p1089_p1), %v1100_v29, 0.0 }
 0x350   : > { %v1485_v0 = vpop.f32.mrf.mxu1  ;;  %v1098_v24 = vld [vmem:[#allocation11 + $0x20] sm:$0xff] (%p1089_p1) }
 0x351   : > { %1081 = vst [vmem:[#allocation11 + $0x40] sm:$0xff] %v1065_v63  ;;  %v1068_v2 = vadd.f32 %v1485_v0, %v883_v62  ;;  %v1114_v27 = vmax.f32 (%p1089_p1), %v1098_v24, 0.0  ;;  %1132 = vst [vmem:[#allocation11 + $0x30] sm:$0xff] (%p1089_p1), %v1116_v32 }
 0x352   : > { %v1029_v3 = vpop.f32.mrf.mxu1  ;;  %v1101_v30 = vld [vmem:[#allocation11 + $0x38] sm:$0xff] (%p1089_p1) }
 0x353   : > { %1084 = vst [vmem:[#allocation11 + $0x58] sm:$0xff] %v1068_v2  ;;  %v1066_v5 = vadd.f32 %v1029_v3, %v881_v1  ;;  %v1117_v33 = vmax.f32 (%p1089_p1), %v1101_v30, 0.0  ;;  %1130 = vst [vmem:[#allocation11 + $0x20] sm:$0xff] (%p1089_p1), %v1114_v27 }
 0x354   : > { %v1488_v6 = vpop.f32.mrf.mxu1  ;;  %v1099_v25 = vld [vmem:[#allocation11 + $0x28] sm:$0xff] (%p1089_p1) }
 0x355   : > { %1082 = vst [vmem:[#allocation11 + $0x48] sm:$0xff] %v1066_v5  ;;  %v1071_v8 = vadd.f32 %v1488_v6, %v886_v4  ;;  %v1115_v28 = vmax.f32 (%p1089_p1), %v1099_v25, 0.0  ;;  %1133 = vst [vmem:[#allocation11 + $0x38] sm:$0xff] (%p1089_p1), %v1117_v33 }
 0x356   : > { %v1042_v9 = vpop.f32.mrf.mxu1  ;;  %v1104_v36 = vld [vmem:[#allocation11 + $0x50] sm:$0xff] (%p1089_p1) }
 0x357   : > { %1087 = vst [vmem:[#allocation11 + $0x70] sm:$0xff] %v1071_v8  ;;  %v1069_v11 = vadd.f32 %v1042_v9, %v884_v7  ;;  %1131 = vst [vmem:[#allocation11 + $0x28] sm:$0xff] (%p1089_p1), %v1115_v28  ;;  %v1120_v39 = vmax.f32 (%p1089_p1), %v1104_v36, 0.0 }
 0x358   : > { %v1489_v12 = vpop.f32.mrf.mxu1  ;;  %v1102_v31 = vld [vmem:[#allocation11 + $0x40] sm:$0xff] (%p1089_p1) }
 0x359   : > { %1085 = vst [vmem:[#allocation11 + $0x60] sm:$0xff] %v1069_v11  ;;  %v1072_v14 = vadd.f32 %v1489_v12, %v887_v10  ;;  %1093 = sbr.rel (!%p1089_p1) target bundleno = 872 (0x368), region = 72  ;;  %v1118_v34 = vmax.f32 (%p1089_p1), %v1102_v31, 0.0  ;;  %1136 = vst [vmem:[#allocation11 + $0x50] sm:$0xff] (%p1089_p1), %v1120_v39 }
 0x35a   : > { %v1045_v15 = vpop.f32.mrf.mxu1  ;;  %v1105_v37 = vld [vmem:[#allocation11 + $0x58] sm:$0xff] (%p1089_p1) }
 0x35b   : > { %1088 = vst [vmem:[#allocation11 + $0x78] sm:$0xff] %v1072_v14  ;;  %v1070_v16 = vadd.f32 %v1045_v15, %v885_v13  ;;  %v1121_v40 = vmax.f32 (%p1089_p1), %v1105_v37, 0.0  ;;  %1134 = vst [vmem:[#allocation11 + $0x40] sm:$0xff] (%p1089_p1), %v1118_v34 }
 0x35c   : > { %v1103_v35 = vld [vmem:[#allocation11 + $0x48] sm:$0xff] (%p1089_p1) }
 0x35d   : > { %1086 = vst [vmem:[#allocation11 + $0x68] sm:$0xff] %v1070_v16  ;;  %v1119_v38 = vmax.f32 (%p1089_p1), %v1103_v35, 0.0  ;;  %1137 = vst [vmem:[#allocation11 + $0x58] sm:$0xff] (%p1089_p1), %v1121_v40 }
 0x35e   : > { %v1108_v43 = vld [vmem:[#allocation11 + $0x70] sm:$0xff] }
 0x35f   : > { %v1124_v46 = vmax.f32 %v1108_v43, 0.0  ;;  %1135 = vst [vmem:[#allocation11 + $0x48] sm:$0xff] %v1119_v38 }
 0x360   : > { %v1106_v41 = vld [vmem:[#allocation11 + $0x60] sm:$0xff] }
 0x361   : > { %v1122_v44 = vmax.f32 %v1106_v41, 0.0  ;;  %1140 = vst [vmem:[#allocation11 + $0x70] sm:$0xff] %v1124_v46 }
 0x362   : > { %v1109_v47 = vld [vmem:[#allocation11 + $0x78] sm:$0xff] }
 0x363   : > { %v1125_v48 = vmax.f32 %v1109_v47, 0.0  ;;  %1138 = vst [vmem:[#allocation11 + $0x60] sm:$0xff] %v1122_v44 }
 0x364   : > { %v1107_v42 = vld [vmem:[#allocation11 + $0x68] sm:$0xff] }
 0x365   : > { %v1123_v45 = vmax.f32 %v1107_v42, 0.0  ;;  %1141 = vst [vmem:[#allocation11 + $0x78] sm:$0xff] %v1125_v48 }
 0x367   : > { %1139 = vst [vmem:[#allocation11 + $0x68] sm:$0xff] %v1123_v45 }
 0x368 PF: > { %p1550_p4 = scmp.eq.s32.totalorder %s1948_s27, 1  ;;  %s1881_s24 = smov [#allocation11]  }
 0x369   : > { %s1151_s9 = sshll.u32 %s1881_s24, 4  ;;  %s1152_s9 = int_to_ptr.vmem [resolvable:$true] %s1151_s9 }
 0x36a   : > { %s1782_s8 = scalar_lea.vmem %s1152_s9, 2048  ;;  %p1789_p0 = scmp.lt.s32.totalorder %s1152_s9, %s1152_s9 }
 0x36b   : > { %p1783_p7 = scmp.ne.s32.totalorder %s1152_s9, %s1782_s8  ;;  %p1790_p2 = scmp.lt.s32.totalorder %s1782_s8, %s1782_s8 }
 0x36d   : > { %p1784_p6 = pnand %p1783_p7, %p1550_p4  ;;  %p1791_p3 = por %p1790_p2, %p1789_p0 }
 0x36f   : > { %p1785_p13 = pneg %p1784_p6 }
 0x371   : > { %p1792_p9 = pnand %p1791_p3, %p1785_p13 }
 0x373   : > { %1795 = shalt.err (!%p1792_p9)
}
 0x374   : > { %s1882_s13 = smov 128   ;;  %s1883_s7 = smov 8  }
 0x375   : > { %1523 = dma.vmem_to_hbm [thread:$0]  (%p1550_p4), %s1152_s9, 2048, %s2145_s6, [#allocation4], %s1882_s13, %s1882_s13, %s1883_s7  }
 0x376   : > { %1847 = dma.done.wait (%p1550_p4), [#allocation4], 2048  }
 0x377   : > { %1849 = vsyncadd (%p1550_p4), [#allocation4], 4294965248 }
 0x378 PF: > { %s24_s26 = sadd.s32 1, %s1872_s26   ;;  %s2158_s21 = smov %s1856_s22 }
 0x379   : > { %p21_p10 = scmp.ge.s32.totalorder %s24_s26, 4   ;;  %s2159_s22 = smov %s1860_s23 }
 0x37a   : > { %s2160_s23 = smov %s2020_s12  ;;  %s2161_s24 = smov %s1868_s25 }
 0x37b   : > { %s2162_s25 = smov %s2164_s10  ;;  %23 = sbr.rel (!%p21_p10) target bundleno = 10 (0xa), region = 117 }
 0x380   :  { %1167 = vsyncpa [#allocation3], 1 }
 0x381   :  { %1169 = vsyncpa [#allocation3 + $0x1], 1 }
 0x382   :  { %1170 = vsyncpa [#allocation6], 1 }
 0x383   :  { %1172 = vsyncpa [#allocation6 + $0x1], 1 }
 0x384   :  { %1173 = vsyncpa [#allocation9], 1 }
 0x385   :  { %1174 = vsyncpa [#allocation4], 1 }
 0x386   :  { %1176 = vsyncpa [#allocation4 + $0x1], 1 }

</bundles_post_ra>
